<compile_context>
chip_gen: v5e
topology: v5e:2x2
jax: 0.10.0
libtpu: 0.0.40
codegen_flags: <defaults>
</compile_context>

<pallas_src>
import functools

import jax
import jax.numpy as jnp
import numpy as np
from jax import lax
from jax.experimental import pallas as pl
from jax.experimental.pallas import tpu as pltpu

LANES = 128                    # vreg lane width (fast axis)
SUBLANES = 8                   # f32 sublanes per vreg
GROUP = 32                     # rows per weight group; layers padded to GROUP*LANES elems
GROUP_ELEMS = GROUP * LANES    # 4096 elements
CHUNK_ROWS = 128               # rows per in-kernel reduction step (bounds live vregs)
MAX_TILE_ROWS = 8192           # 8192 x 128 f32 = 4 MiB per input per pipeline buffer
ROW_QUANTUM = 256              # tile_rows multiple of this (= GROUP*SUBLANES, mult of CHUNK)


def _cdiv(a, b):
    return -(-a // b)


def _round_up(a, b):
    return _cdiv(a, b) * b


def _make_tile_kernel(tile_rows):
    """Per-tile kernel: (8,128) f32 partial of sum(per-group weight * |a - b|).

    Pure VPU: loads, casts, sub/abs/mul, and vreg-wise adds.  No cross-lane
    reduction and no scalar accumulator; the tiny per-tile partials are summed
    in cheap JAX glue.
    """
    n_chunks = tile_rows // CHUNK_ROWS
    gpc = CHUNK_ROWS // GROUP  # weight groups per chunk (static, =4)

    def kernel(a_ref, b_ref, w_ref, o_ref):
        def body(k, acc):
            r0 = pl.multiple_of(k * CHUNK_ROWS, CHUNK_ROWS)
            g0 = pl.multiple_of(k * gpc, gpc)
            a = a_ref[pl.ds(r0, CHUNK_ROWS), :].astype(jnp.float32)
            b = b_ref[pl.ds(r0, CHUNK_ROWS), :].astype(jnp.float32)
            w = w_ref[pl.ds(g0, gpc), :]                        # (gpc, 128) f32
            d = jnp.abs(a - b).reshape(gpc, GROUP, LANES)       # (gpc, 32, 128)
            d = d * w[:, None, :]                               # sublane broadcast
            d = d.reshape(-1, SUBLANES, LANES)                  # (CHUNK/8, 8, 128)
            return acc + jnp.sum(d, axis=0)                     # vreg-wise adds

        o_ref[...] = lax.fori_loop(
            0, n_chunks, body, jnp.zeros((SUBLANES, LANES), jnp.float32))

    return kernel


@functools.partial(jax.jit, static_argnames=("tile_rows",))
def _fused_weighted_l1(a2, b2, w2, *, tile_rows):
    """sum over rows of (per-group weight * sum_lanes |a2 - b2|) via one pallas_call."""
    total_rows = a2.shape[0]
    tiles = total_rows // tile_rows
    out_rows = tiles * SUBLANES
    isz_a = jnp.dtype(a2.dtype).itemsize
    isz_b = jnp.dtype(b2.dtype).itemsize
    n_elems = a2.size

    # Double-buffered input windows + output, plus margin for internal scratch.
    vmem_needed = (2 * tile_rows * LANES * (isz_a + isz_b)
                   + 2 * (tile_rows // GROUP) * LANES * 4
                   + 2 * SUBLANES * LANES * 4)
    # Explicit limit: > v5e's 16 MiB default scoped VMEM, well under v7x's
    # 64 MiB physical VMEM.
    vmem_limit = int(min(max(vmem_needed + (4 << 20), 32 << 20), 48 << 20))

    partial = pl.pallas_call(
        _make_tile_kernel(tile_rows),
        out_shape=jax.ShapeDtypeStruct((out_rows, LANES), jnp.float32),
        grid_spec=pltpu.PrefetchScalarGridSpec(
            num_scalar_prefetch=0,
            grid=(tiles,),
            in_specs=[
                pl.BlockSpec((tile_rows, LANES), lambda i: (i, 0)),
                pl.BlockSpec((tile_rows, LANES), lambda i: (i, 0)),
                pl.BlockSpec((tile_rows // GROUP, LANES), lambda i: (i, 0)),
            ],
            out_specs=pl.BlockSpec((SUBLANES, LANES), lambda i: (i, 0)),
        ),
        compiler_params=pltpu.CompilerParams(
            # Independent output block per tile -> shards across both
            # TensorCores on v7x.
            dimension_semantics=("parallel",),
            vmem_limit_bytes=vmem_limit,
            # Let XLA fuse the (cast/pad/concat/broadcast) producers into the
            # kernel inputs instead of materializing the slabs in HBM.
            allow_input_fusion=[0, 1, 2],
        ),
        cost_estimate=pl.CostEstimate(
            flops=4 * int(n_elems),
            transcendentals=0,
            bytes_accessed=int(n_elems * (isz_a + isz_b)
                               + w2.size * 4 + out_rows * LANES * 4),
        ),
    )(a2, b2, w2)

    # Tiny glue reduction (weights already applied in-kernel).
    return jnp.sum(partial)


def feature_match_loss(
    feats_hat,
    feats,
    *,
    average_by_layers: bool = True,
    average_by_discriminators: bool = True,
    include_final_outputs: bool = False,
):
    """JAX/Pallas equivalent of FeatureMatchLoss.forward.

    feats_hat / feats: list (per discriminator) of list (per layer) of arrays
    (or list of arrays, iterated along the leading axis, like the original).
    `feats` is the detached ground truth; no grad is taken here so .detach()
    is semantically a no-op.
    """
    # Mirror the PyTorch loop structure to collect per-layer pairs + denominators.
    selected = []  # (feat_hat, feat, layer_denom)
    num_disc = 0
    for feats_hat_, feats_ in zip(feats_hat, feats):
        num_disc += 1
        if not include_final_outputs:
            feats_hat_ = feats_hat_[:-1]
            feats_ = feats_[:-1]
        layers = list(zip(feats_hat_, feats_))
        layer_denom = len(layers) if average_by_layers else 1
        for fh, f in layers:
            fh = jnp.asarray(fh)
            f = jnp.asarray(f)
            assert fh.shape == f.shape, (fh.shape, f.shape)
            selected.append((fh, f, layer_denom))
    if not selected:
        # TODO(synk): the PyTorch original raises (undefined i/j) on empty input.
        return jnp.float32(0.0)
    disc_denom = num_disc if average_by_discriminators else 1

    # Keep each SIDE in its own native dtype (bf16-hat / f32-target stays mixed
    # in HBM; the f32 cast happens in-kernel on the VPU).
    a_dtype = jnp.result_type(*(fh.dtype for fh, _, _ in selected))
    b_dtype = jnp.result_type(*(f.dtype for _, f, _ in selected))

    a_parts, b_parts, w_groups = [], [], []
    for fh, f, layer_denom in selected:
        n = int(fh.size)
        if n == 0:
            # TODO(synk): PyTorch would propagate NaN from an empty l1_loss.
            continue
        groups = _cdiv(n, GROUP_ELEMS)
        padded = groups * GROUP_ELEMS
        a_flat = fh.reshape(-1)
        b_flat = f.reshape(-1)
        if a_flat.dtype != a_dtype:
            a_flat = a_flat.astype(a_dtype)
        if b_flat.dtype != b_dtype:
            b_flat = b_flat.astype(b_dtype)
        if padded != n:
            # |0 - 0| = 0 -> padding never contributes to the sum.
            a_flat = jnp.pad(a_flat, (0, padded - n))
            b_flat = jnp.pad(b_flat, (0, padded - n))
        a_parts.append(a_flat.reshape(groups * GROUP, LANES))
        b_parts.append(b_flat.reshape(groups * GROUP, LANES))
        w_groups.append(
            np.full((groups,), 1.0 / (float(n) * layer_denom * disc_denom),
                    dtype=np.float32))
    if not a_parts:
        return jnp.float32(0.0)

    total_rows = sum(int(p.shape[0]) for p in a_parts)
    if total_rows >= 2 * MAX_TILE_ROWS:
        tile_rows = MAX_TILE_ROWS
    else:
        # Aim for >= 2 tiles (v7x megacore) on mid-size inputs.
        tile_rows = max(ROW_QUANTUM, _round_up(_cdiv(total_rows, 2), ROW_QUANTUM))
    tiles = _cdiv(total_rows, tile_rows)
    pad_rows = tiles * tile_rows - total_rows

    if pad_rows:
        # At most one tile's worth of zero filler (weights zero there too).
        a_parts.append(jnp.zeros((pad_rows, LANES), dtype=a_dtype))
        b_parts.append(jnp.zeros((pad_rows, LANES), dtype=b_dtype))
        w_groups.append(np.zeros((pad_rows // GROUP,), dtype=np.float32))

    a2 = a_parts[0] if len(a_parts) == 1 else jnp.concatenate(a_parts, axis=0)
    b2 = b_parts[0] if len(b_parts) == 1 else jnp.concatenate(b_parts, axis=0)
    wg = np.concatenate(w_groups)  # (total_rows // GROUP,) f32, host-built
    w2 = jnp.broadcast_to(jnp.asarray(wg)[:, None], (wg.shape[0], LANES))

    return _fused_weighted_l1(a2, b2, w2, tile_rows=tile_rows)


if __name__ == "__main__":
    key = jax.random.PRNGKey(0)

    # Synthetic discriminator feature pyramids (HiFi-GAN / VITS style):
    # 2 discriminators, each with 4 intermediate feature maps + 1 final output.
    # The second discriminator uses awkward sizes to exercise the padding path.
    feat_shapes = [
        [(2, 4, 16, 8), (2, 8, 8, 8), (2, 16, 4, 8), (2, 32, 2, 8), (2, 1, 2, 8)],
        [(2, 4, 63), (2, 8, 31), (2, 7, 37), (2, 32, 9), (2, 1, 8)],
    ]

    feats_hat, feats = [], []
    for disc_shapes in feat_shapes:
        hat_layers, ref_layers = [], []
        for shp in disc_shapes:
            key, k1, k2 = jax.random.split(key, 3)
            hat_layers.append(jax.random.normal(k1, shp, dtype=jnp.float32))
            ref_layers.append(jax.random.normal(k2, shp, dtype=jnp.float32))
        feats_hat.append(hat_layers)
        feats.append(ref_layers)

    # Pure-JAX reference (mirrors the PyTorch forward).
    def ref_loss(feats_hat, feats):
        total = 0.0
        n_disc = 0
        for fh_, f_ in zip(feats_hat, feats):
            n_disc += 1
            fh_, f_ = fh_[:-1], f_[:-1]
            sub = 0.0
            n_layers = 0
            for fh, f in zip(fh_, f_):
                n_layers += 1
                sub = sub + jnp.mean(
                    jnp.abs(fh.astype(jnp.float32) - f.astype(jnp.float32)))
            total = total + sub / n_layers
        return total / n_disc

    # f32 / f32 case.
    loss = jax.block_until_ready(
        feature_match_loss(feats_hat, feats,
                           average_by_layers=True,
                           average_by_discriminators=True,
                           include_final_outputs=False))
    expected = jax.block_until_ready(ref_loss(feats_hat, feats))
    assert jnp.allclose(loss, expected, rtol=1e-5, atol=1e-5), (loss, expected)

    # Mixed-precision case: bf16 generator features vs f32 targets (native
    # dtypes are kept in HBM; cast to f32 happens in-kernel).
    feats_hat_bf16 = [[x.astype(jnp.bfloat16) for x in d] for d in feats_hat]
    loss_mixed = jax.block_until_ready(feature_match_loss(feats_hat_bf16, feats))
    expected_mixed = jax.block_until_ready(ref_loss(feats_hat_bf16, feats))
    assert jnp.allclose(loss_mixed, expected_mixed, rtol=1e-5, atol=1e-5), (
        loss_mixed, expected_mixed)

    print("KERNEL_OK")
</pallas_src>

<mosaic_0001>
module attributes {stable_mosaic.version = 11 : i64} {
  func.func @kernel(%arg0: i32, %arg1: memref<256x128xf32, #tpu.memory_space<vmem>>, %arg2: memref<256x128xf32, #tpu.memory_space<vmem>>, %arg3: memref<8x128xf32, #tpu.memory_space<vmem>>, %arg4: memref<8x128xf32, #tpu.memory_space<vmem>>) attributes {dimension_semantics = [#tpu.dimension_semantics<parallel>], iteration_bounds = array<i64: 1>, scalar_prefetch = 0 : i64, scratch_operands = 0 : i64, tpu.core_type = #tpu.core_type<tc>, window_params = [{transform_indices = @transform_0, window_bounds = array<i64: 256, 128>}, {transform_indices = @transform_1, window_bounds = array<i64: 256, 128>}, {transform_indices = @transform_2, window_bounds = array<i64: 8, 128>}, {transform_indices = @transform_3, window_bounds = array<i64: 8, 128>}]} {
    %cst = arith.constant 0.000000e+00 : f32
    %0 = vector.broadcast %cst : f32 to vector<8x128xf32>
    %c0_i32 = arith.constant 0 : i32
    %c2_i32 = arith.constant 2 : i32
    %1 = arith.addi %c0_i32, %c2_i32 : i32
    %c1_i32 = arith.constant 1 : i32
    %2 = scf.for %arg5 = %c0_i32 to %1 step %c1_i32 iter_args(%arg6 = %0) -> (vector<8x128xf32>)  : i32 {
      %c128_i32 = arith.constant 128 : i32
      %4 = arith.muli %arg5, %c128_i32 : i32
      %5 = tpu.assume_multiple %4, 128 : i32
      %c4_i32 = arith.constant 4 : i32
      %6 = arith.muli %arg5, %c4_i32 : i32
      %7 = tpu.assume_multiple %6, 4 : i32
      %8 = arith.index_cast %5 : i32 to index
      %c0_2 = arith.constant 0 : index
      %9 = vector.load %arg1[%8, %c0_2] : memref<256x128xf32, #tpu.memory_space<vmem>>, vector<128x128xf32>
      %10 = arith.index_cast %5 : i32 to index
      %c0_3 = arith.constant 0 : index
      %11 = vector.load %arg2[%10, %c0_3] : memref<256x128xf32, #tpu.memory_space<vmem>>, vector<128x128xf32>
      %12 = arith.index_cast %7 : i32 to index
      %c0_4 = arith.constant 0 : index
      %13 = vector.load %arg3[%12, %c0_4] : memref<8x128xf32, #tpu.memory_space<vmem>>, vector<4x128xf32>
      %14 = arith.subf %9, %11 : vector<128x128xf32>
      %15 = math.absf %14 : vector<128x128xf32>
      %16 = vector.shape_cast %15 : vector<128x128xf32> to vector<4x32x128xf32>
      %17 = vector.shape_cast %13 : vector<4x128xf32> to vector<4x1x128xf32>
      %18 = vector.broadcast %17 : vector<4x1x128xf32> to vector<4x32x128xf32>
      %19 = arith.mulf %16, %18 : vector<4x32x128xf32>
      %20 = vector.shape_cast %19 : vector<4x32x128xf32> to vector<16x8x128xf32>
      %cst_5 = arith.constant dense<0.000000e+00> : vector<8x128xf32>
      %21 = vector.multi_reduction <add>, %20, %cst_5 [0] : vector<16x8x128xf32> to vector<8x128xf32>
      %22 = arith.addf %arg6, %21 : vector<8x128xf32>
      scf.yield %22 : vector<8x128xf32>
    }
    %c2_i32_0 = arith.constant 2 : i32
    %c0 = arith.constant 0 : index
    %c0_1 = arith.constant 0 : index
    %3 = vector.load %arg4[%c0, %c0_1] : memref<8x128xf32, #tpu.memory_space<vmem>>, vector<8x128xf32>
    tpu.vector_store %arg4[%c0, %c0_1], %2 {strides = array<i32>} : memref<8x128xf32, #tpu.memory_space<vmem>>, vector<8x128xf32>,
    return
  }
  func.func @transform_0(%arg0: i32) -> (i32, i32) {
    %c0_i32 = arith.constant 0 : i32
    %c0_i32_0 = arith.constant 0 : i32
    return %arg0, %c0_i32 : i32, i32
  }
  func.func @transform_1(%arg0: i32) -> (i32, i32) {
    %c0_i32 = arith.constant 0 : i32
    %c0_i32_0 = arith.constant 0 : i32
    return %arg0, %c0_i32 : i32, i32
  }
  func.func @transform_2(%arg0: i32) -> (i32, i32) {
    %c0_i32 = arith.constant 0 : i32
    %c0_i32_0 = arith.constant 0 : i32
    return %arg0, %c0_i32 : i32, i32
  }
  func.func @transform_3(%arg0: i32) -> (i32, i32) {
    %c0_i32 = arith.constant 0 : i32
    %c0_i32_0 = arith.constant 0 : i32
    return %arg0, %c0_i32 : i32, i32
  }
}

</mosaic_0001>

<bundles_post_ra>
// kernel: _fused_weighted_l1.1
= control target key start
LH: loop header
LB: loop body
LE: loop exit
PB: predicated region body
PF: predicated region fallthrough
CT: control target
= control target key end

     0   :  { %8 = vsyncpa [#allocation3], 0  ;;  %s413_s0 = inlined_call_operand.hbm [shape: f32[256,128], index: 0, kind: input, shape index: {}]   ;;  %s414_s1 = inlined_call_operand.hbm [shape: f32[256,128], index: 1, kind: input, shape index: {}]   ;;  %s415_s2 = inlined_call_operand.hbm [shape: f32[8,128], index: 2, kind: input, shape index: {}]   ;;  %s416_s3 = inlined_call_operand.vmem [shape: f32[8,128], index: 3, kind: output, shape index: {}]  }
   0x1   :  { %9 = vsyncpa [#allocation5], 0  ;;  %s27_s14 = sshll.u32 %s414_s1, 4  ;;  %s316_s15 = smov [#allocation4]   ;;  %s28_s14 = int_to_ptr.hbm [resolvable:$true] %s27_s14 }
   0x2   :  { %s29_s16 = sshll.u32 %s316_s15, 4  ;;  %s14_s19 = sshll.u32 %s413_s0, 4  ;;  %s30_s16 = int_to_ptr.vmem [resolvable:$true] %s29_s16  ;;  %s15_s19 = int_to_ptr.hbm [resolvable:$true] %s14_s19 }
   0x3   :  { %s317_s20 = smov 128   ;;  %s318_s21 = smov 8  }
   0x4   :  { %35 = dma.hbm_to_vmem [thread:$0]  %s28_s14, 4096, %s30_s16, [#allocation5], %s317_s20, %s317_s20, %s318_s21  }
   0x5   :  { %s319_s22 = smov [#allocation2]   ;;  %s41_s26 = sshll.u32 %s415_s2, 4  ;;  %s42_s26 = int_to_ptr.hbm [resolvable:$true] %s41_s26 }
   0x6   :  { %s16_s23 = sshll.u32 %s319_s22, 4  ;;  %s320_s1 = smov [#allocation6]   ;;  %s17_s23 = int_to_ptr.vmem [resolvable:$true] %s16_s23 }
   0x7   :  { %22 = dma.hbm_to_vmem [thread:$0]  %s15_s19, 4096, %s17_s23, [#allocation3], %s317_s20, %s317_s20, %s318_s21  }
   0x8   :  { %s43_s27 = sshll.u32 %s320_s1, 4  ;;  %s44_s27 = int_to_ptr.vmem [resolvable:$true] %s43_s27 }
   0x9   :  { %46 = dma.hbm_to_vmem [thread:$0]  %s42_s26, 128, %s44_s27, [#allocation5]  }
   0xa   :  { %304 = dma.done.wait [#allocation3], 4096  }
   0xb   :  { %305 = vsyncadd [#allocation3], 4294963200 }
   0xc   :  { %306 = dma.done.wait [#allocation5], 4224  }
   0xd   :  { %307 = vsyncadd [#allocation5], 4294963072  ;;  %v350_v0 = vmov 0.0   ;;  %s352_s0 = smov 0  }
   0xe LB: > { %s201_s2 = sshll.u32 %s314_s0, 7  ;;  %s202_s29 = sshll.u32 %s314_s0, 2  ;;  %s314_s0 = sphi %s352_s0, %s64_s0   ;;  %v310_v0 = vphi %v350_v0, %v417_v0  }
   0xf   : > { %s361_s28 = scalar_lea.vmem [#allocation2], %s201_s2  ;;  %s366_s30 = scalar_lea.vmem [#allocation4], %s201_s2 }
  0x10   : > { %v69_v1 = vld [vmem:[%s361_s28] sm:$0xff]  ;;  %v70_v2 = vld [vmem:[%s361_s28 + $0x8] sm:$0xff]  ;;  %v71_v5 = vld [vmem:[%s361_s28 + $0x10] sm:$0xff]  ;;  %s102_s4 = scalar_lea.vmem [#allocation6], %s202_s29  ;;  %s64_s0 = sadd.s32 1, %s314_s0  }
  0x11   : > { %v86_v3 = vld [vmem:[%s366_s30] sm:$0xff]  ;;  %v87_v4 = vld [vmem:[%s366_s30 + $0x8] sm:$0xff]  ;;  %v88_v6 = vld [vmem:[%s366_s30 + $0x10] sm:$0xff]  ;;  %p61_p0 = scmp.ge.s32.totalorder %s64_s0, 2  }
  0x12   : > { %v104_v7 = vsub.f32 %v69_v1, %v86_v3  ;;  %v105_v8 = vsub.f32 %v70_v2, %v87_v4  ;;  %v72_v9 = vld [vmem:[%s361_s28 + $0x18] sm:$0xff]  ;;  %v106_v11 = vsub.f32 %v71_v5, %v88_v6  ;;  %v73_v12 = vld [vmem:[%s361_s28 + $0x20] sm:$0xff]  ;;  %v74_v18 = vld [vmem:[%s361_s28 + $0x28] sm:$0xff] }
  0x13   : > { %v89_v10 = vld [vmem:[%s366_s30 + $0x18] sm:$0xff]  ;;  %v90_v13 = vld [vmem:[%s366_s30 + $0x20] sm:$0xff]  ;;  %v91_v19 = vld [vmem:[%s366_s30 + $0x28] sm:$0xff] }
  0x14   : > { %v376_v14 = vld [vmem:[%s102_s4] sm:$0xf]  ;;  %v107_v15 = vsub.f32 %v72_v9, %v89_v10  ;;  %v120_v16 = vand.u32 2147483647, %v104_v7  ;;  %v121_v17 = vand.u32 2147483647, %v105_v8  ;;  %v108_v20 = vsub.f32 %v73_v12, %v90_v13 }
  0x15   : > { %v122_v21 = vand.u32 2147483647, %v106_v11  ;;  %v137_v22 = vrot.slane %v376_v14, 1  ;;  %v140_v23 = vperm.slane %v376_v14, 0  ;;  %v75_v24 = vld [vmem:[%s361_s28 + $0x30] sm:$0xff]  ;;  %v109_v26 = vsub.f32 %v74_v18, %v91_v19  ;;  %v76_v30 = vld [vmem:[%s361_s28 + $0x38] sm:$0xff] }
  0x16   : > { %v92_v25 = vld [vmem:[%s366_s30 + $0x30] sm:$0xff]  ;;  %v123_v27 = vand.u32 2147483647, %v107_v15  ;;  %v93_v31 = vld [vmem:[%s366_s30 + $0x38] sm:$0xff]  ;;  %v77_v32 = vld [vmem:[%s361_s28 + $0x40] sm:$0xff]  ;;  %v138_v48 = vrot.slane %v376_v14, 2 }
  0x17   : > { %v148_v28 = vmul.f32 %v140_v23, %v120_v16  ;;  %v149_v29 = vmul.f32 %v140_v23, %v121_v17  ;;  %v94_v33 = vld [vmem:[%s366_s30 + $0x40] sm:$0xff]  ;;  %v110_v34 = vsub.f32 %v75_v24, %v92_v25  ;;  %v124_v35 = vand.u32 2147483647, %v108_v20  ;;  %v78_v42 = vld [vmem:[%s361_s28 + $0x48] sm:$0xff]  ;;  %v79_v45 = vld [vmem:[%s361_s28 + $0x50] sm:$0xff] }
  0x18   : > { %v141_v36 = vperm.slane %v137_v22, 0  ;;  %v150_v37 = vmul.f32 %v140_v23, %v122_v21  ;;  %v111_v38 = vsub.f32 %v76_v30, %v93_v31  ;;  %v125_v39 = vand.u32 2147483647, %v109_v26  ;;  %v95_v43 = vld [vmem:[%s366_s30 + $0x48] sm:$0xff]  ;;  %v96_v46 = vld [vmem:[%s366_s30 + $0x50] sm:$0xff]  ;;  %v80_v55 = vld [vmem:[%s361_s28 + $0x58] sm:$0xff] }
  0x19   : > { %v151_v40 = vmul.f32 %v140_v23, %v123_v27  ;;  %v164_v41 = vadd.f32 %v149_v29, %v148_v28  ;;  %v112_v44 = vsub.f32 %v77_v32, %v94_v33  ;;  %v126_v47 = vand.u32 2147483647, %v110_v34  ;;  %v97_v56 = vld [vmem:[%s366_s30 + $0x58] sm:$0xff]  ;;  %v81_v58 = vld [vmem:[%s361_s28 + $0x60] sm:$0xff]  ;;  %v82_v5 = vld [vmem:[%s361_s28 + $0x68] sm:$0xff] }
  0x1a   : > { %v152_v49 = vmul.f32 %v141_v36, %v124_v35  ;;  %v113_v51 = vsub.f32 %v78_v42, %v95_v43  ;;  %v127_v52 = vand.u32 2147483647, %v111_v38  ;;  %v153_v53 = vmul.f32 %v141_v36, %v125_v39  ;;  %v98_v59 = vld [vmem:[%s366_s30 + $0x60] sm:$0xff]  ;;  %v99_v6 = vld [vmem:[%s366_s30 + $0x68] sm:$0xff]  ;;  %v83_v8 = vld [vmem:[%s361_s28 + $0x70] sm:$0xff] }
  0x1b   : > { %v165_v50 = vadd.f32 %v164_v41, %v150_v37  ;;  %v114_v57 = vsub.f32 %v79_v45, %v96_v46  ;;  %v128_v60 = vand.u32 2147483647, %v112_v44  ;;  %v142_v61 = vperm.slane %v138_v48, 0  ;;  %v100_v9 = vld [vmem:[%s366_s30 + $0x70] sm:$0xff]  ;;  %v84_v19 = vld [vmem:[%s361_s28 + $0x78] sm:$0xff] }
  0x1c   : > { %v154_v62 = vmul.f32 %v141_v36, %v126_v47  ;;  %v115_v1 = vsub.f32 %v80_v55, %v97_v56  ;;  %v129_v2 = vand.u32 2147483647, %v113_v51  ;;  %v155_v3 = vmul.f32 %v141_v36, %v127_v52  ;;  %v101_v20 = vld [vmem:[%s366_s30 + $0x78] sm:$0xff] }
  0x1d   : > { %v166_v54 = vadd.f32 %v165_v50, %v151_v40  ;;  %v116_v7 = vsub.f32 %v81_v58, %v98_v59  ;;  %v130_v10 = vand.u32 2147483647, %v114_v57  ;;  %v139_v11 = vrot.slane %v376_v14, 3 }
  0x1e   : > { %v156_v12 = vmul.f32 %v142_v61, %v128_v60  ;;  %v117_v15 = vsub.f32 %v82_v5, %v99_v6  ;;  %v131_v16 = vand.u32 2147483647, %v115_v1  ;;  %v157_v17 = vmul.f32 %v142_v61, %v129_v2 }
  0x1f   : > { %v167_v63 = vadd.f32 %v166_v54, %v152_v49  ;;  %v118_v21 = vsub.f32 %v83_v8, %v100_v9  ;;  %v132_v22 = vand.u32 2147483647, %v116_v7  ;;  %v143_v23 = vperm.slane %v139_v11, 0 }
  0x20   : > { %v158_v24 = vmul.f32 %v142_v61, %v130_v10  ;;  %v119_v26 = vsub.f32 %v84_v19, %v101_v20  ;;  %v133_v27 = vand.u32 2147483647, %v117_v15  ;;  %v159_v28 = vmul.f32 %v142_v61, %v131_v16 }
  0x21   : > { %v168_v4 = vadd.f32 %v167_v63, %v153_v53  ;;  %v134_v30 = vand.u32 2147483647, %v118_v21  ;;  %v160_v31 = vmul.f32 %v143_v23, %v132_v22 }
  0x22   : > { %v135_v32 = vand.u32 2147483647, %v119_v26  ;;  %v161_v33 = vmul.f32 %v143_v23, %v133_v27 }
  0x23   : > { %v169_v13 = vadd.f32 %v168_v4, %v154_v62  ;;  %v162_v35 = vmul.f32 %v143_v23, %v134_v30 }
  0x24   : > { %v163_v37 = vmul.f32 %v143_v23, %v135_v32 }
  0x25   : > { %v170_v18 = vadd.f32 %v169_v13, %v155_v3 }
  0x27   : > { %v171_v25 = vadd.f32 %v170_v18, %v156_v12 }
  0x29   : > { %v172_v29 = vadd.f32 %v171_v25, %v157_v17 }
  0x2b   : > { %v173_v14 = vadd.f32 %v172_v29, %v158_v24 }
  0x2d   : > { %v174_v34 = vadd.f32 %v173_v14, %v159_v28 }
  0x2f   : > { %v175_v36 = vadd.f32 %v174_v34, %v160_v31 }
  0x31   : > { %v176_v38 = vadd.f32 %v175_v36, %v161_v33 }
  0x33   : > { %v177_v39 = vadd.f32 %v176_v38, %v162_v35 }
  0x35   : > { %v178_v40 = vadd.f32 %v177_v39, %v163_v37  ;;  %63 = sbr.rel (!%p61_p0) target bundleno = 14 (0xe), region = 54 }
  0x37   : > { %v179_v41 = vadd.f32 %v310_v0, %v178_v40  }
  0x39   : > { %v417_v0 = vmov %v179_v41  ;;  %180 = vst [vmem:[%s416_s3] sm:$0xff] (%p61_p0), %v179_v41 }
  0x3a   :  { %185 = vsyncpa [#allocation3], 1 }
  0x3b   :  { %186 = vsyncpa [#allocation5], 1 }

</bundles_post_ra>
